<compile_context>
chip_gen: v7x
topology: tpu7x:2x2x1
jax: 0.10.0
libtpu: 0.0.40
codegen_flags: <defaults>
</compile_context>

<pallas_src>
import functools

import jax
import jax.numpy as jnp
import numpy as np
from jax.experimental import pallas as pl
from jax.experimental.pallas import tpu as pltpu

EPS = 1e-15
LANE = 128
SUBLANE = 8


def _round_up(v, m):
    return ((v + m - 1) // m) * m


def _pad2d(x, rows, cols):
    return jnp.pad(x, ((0, rows - x.shape[0]), (0, cols - x.shape[1])))


def _nbytes(shape, dtype):
    return int(np.prod(shape)) * jnp.dtype(dtype).itemsize


def _pick_tile(n_p, cap):
    """Largest multiple of 128 that divides n_p and is <= cap (>= 128)."""
    best = LANE
    t = LANE
    top = min(cap, n_p)
    while t <= top:
        if n_p % t == 0:
            best = t
        t += LANE
    return best


def _vmem_capacity_bytes():
    try:
        cap = getattr(pltpu.get_tpu_info(), "vmem_capacity_bytes", None)
        if cap:
            return int(cap)
    except Exception:
        pass
    return 64 * 2**20  # conservative fallback: v7x per-TC VMEM


def _block_nonzero_tables(a_np, tile_m, tile_k):
    """Block-CSR tables for the padded adjacency (host-side, numpy).

    Returns (ids, counts, nnz_tiles):
      ids    : (row_tiles, kt_max) int32 nonzero k-tile indices; padded slots
               repeat the last valid index so Pallas skips the DMA.
      counts : (row_tiles,)        int32 number of valid k-tiles per row tile.
    """
    n_p = a_np.shape[0]
    rt, kt = n_p // tile_m, n_p // tile_k
    blk = np.abs(a_np).reshape(rt, tile_m, kt, tile_k).sum(axis=(1, 3)) > 0
    counts = blk.sum(axis=1).astype(np.int32)
    kt_max = max(int(counts.max()), 1)
    ids = np.zeros((rt, kt_max), np.int32)
    for i in range(rt):
        nz = np.nonzero(blk[i])[0].astype(np.int32)
        if nz.size == 0:          # all-padding row tile: fetch tile 0, compute gated off
            nz = np.zeros((1,), np.int32)
        ids[i, : nz.size] = nz
        ids[i, nz.size:] = nz[-1]
    nnz_tiles = max(int(counts.sum()), 1)
    return jnp.asarray(ids), jnp.asarray(counts), nnz_tiles


# ----------------------------------------------------------------------------
# Pallas kernels
# ----------------------------------------------------------------------------
def _feature_transform_kernel(x_ref, w_ref, o_ref):
    """XW row tile: o = (X[i] @ W), f32 accumulate, bf16 writeback."""
    o_ref[...] = jnp.dot(
        x_ref[...], w_ref[...], preferred_element_type=jnp.float32
    ).astype(o_ref.dtype)


def _gcn_agg_kernel(ids_ref, cnt_ref, a_ref, xw_ref, b_ref, o_ref, acc_ref,
                    *, apply_relu):
    """Block-sparse aggregation: acc += A[i, ids[i,k]] @ XW[ids[i,k]].

    Grid = (row_tiles, kt_max); k (nonzero neighbour-tile index) is last.
      ids_ref: (row_tiles, kt_max) SMEM  nonzero k-tile ids (scalar prefetch)
      cnt_ref: (row_tiles,)        SMEM  valid k-tile counts (scalar prefetch)
      a_ref  : (TM, TK)     bf16  normalized-adjacency tile
      xw_ref : (TK, Fout_p) bf16  precomputed X@W tile
      b_ref  : (1, Fout_p)  f32   bias (resident)
      o_ref  : (TM, Fout_p)       output tile, written only on the last k step
      acc_ref: (TM, Fout_p) f32   accumulator scratch, resident across k
    """
    i = pl.program_id(0)
    k = pl.program_id(1)

    @pl.when(k == 0)
    def _init():
        acc_ref[...] = jnp.zeros_like(acc_ref)

    @pl.when(k < cnt_ref[i])
    def _accum():
        acc_ref[...] += jnp.dot(
            a_ref[...], xw_ref[...], preferred_element_type=jnp.float32
        )

    @pl.when(k == pl.num_programs(1) - 1)
    def _finalize():
        h = acc_ref[...] + b_ref[...]
        if apply_relu:
            h = jnp.maximum(h, 0.0)
        o_ref[...] = h.astype(o_ref.dtype)


def _inner_product_decoder_kernel(zs_ref, zd_ref, o_ref, *, sigmoid):
    """InnerProductDecoder on a lane-dense edge block.

    zs_ref: (Zp, BLOCK_E) bf16  z[src].T block (edges on the lane axis)
    zd_ref: (Zp, BLOCK_E) bf16  z[dst].T block
    o_ref : (1, BLOCK_E)  f32   edge scores (lane-dense, unmasked stores)
    """
    prod = zs_ref[...].astype(jnp.float32) * zd_ref[...].astype(jnp.float32)
    score = jnp.sum(prod, axis=0, keepdims=True)  # cheap sublane reduce
    if sigmoid:
        score = jax.nn.sigmoid(score)
    o_ref[...] = score.astype(o_ref.dtype)


# ----------------------------------------------------------------------------
# pallas_call wrappers
# ----------------------------------------------------------------------------
def feature_transform(x, w, *, out_dtype, tile_m):
    """XW = X @ W (hoisted out of the aggregation k-loop)."""
    n_p, fin = x.shape
    fout = w.shape[1]
    return pl.pallas_call(
        _feature_transform_kernel,
        out_shape=jax.ShapeDtypeStruct((n_p, fout), out_dtype),
        grid_spec=pltpu.PrefetchScalarGridSpec(
            num_scalar_prefetch=0,
            grid=(n_p // tile_m,),
            in_specs=[
                pl.BlockSpec((tile_m, fin), lambda i: (i, 0)),
                pl.BlockSpec((fin, fout), lambda i: (0, 0)),
            ],
            out_specs=pl.BlockSpec((tile_m, fout), lambda i: (i, 0)),
        ),
        compiler_params=pltpu.CompilerParams(dimension_semantics=("parallel",)),
    )(x, w)


def gcn_aggregate(a, xw, b, ktile_ids, ktile_cnt, *, apply_relu, out_dtype,
                  tile_m, tile_k, nnz_tiles):
    """o = maybe_relu(A @ XW + b) with block-sparse A tiling."""
    n_p = a.shape[0]
    fout = xw.shape[1]
    rt = n_p // tile_m
    kt_max = ktile_ids.shape[1]

    flops = 2 * nnz_tiles * tile_m * tile_k * fout
    bytes_accessed = (
        nnz_tiles * (_nbytes((tile_m, tile_k), a.dtype)
                     + _nbytes((tile_k, fout), xw.dtype))
        + _nbytes((1, fout), b.dtype)
        + _nbytes((n_p, fout), out_dtype)
    )
    cost = pl.CostEstimate(flops=int(flops), transcendentals=0,
                           bytes_accessed=int(bytes_accessed))

    # Double-buffered inputs/outputs + f32 accumulator, sized against the
    # reported VMEM capacity (v7x: 64 MiB/TC) with >= 16 MiB headroom.
    vmem_need = (
        2 * _nbytes((tile_m, tile_k), a.dtype)
        + 2 * _nbytes((tile_k, fout), xw.dtype)
        + 2 * _nbytes((1, fout), b.dtype)
        + 2 * _nbytes((tile_m, fout), out_dtype)
        + _nbytes((tile_m, fout), jnp.float32)
    )
    phys = _vmem_capacity_bytes()
    vmem_limit = int(min(max(4 * vmem_need, 32 * 2**20), phys - (16 << 20)))
    vmem_limit = int(max(vmem_limit, vmem_need + (4 << 20)))

    return pl.pallas_call(
        functools.partial(_gcn_agg_kernel, apply_relu=apply_relu),
        out_shape=jax.ShapeDtypeStruct((n_p, fout), out_dtype),
        grid_spec=pltpu.PrefetchScalarGridSpec(
            num_scalar_prefetch=2,
            grid=(rt, kt_max),
            in_specs=[
                pl.BlockSpec((tile_m, tile_k),
                             lambda i, k, ids, cnt: (i, ids[i, k])),
                pl.BlockSpec((tile_k, fout),
                             lambda i, k, ids, cnt: (ids[i, k], 0)),
                pl.BlockSpec((1, fout), lambda i, k, ids, cnt: (0, 0)),
            ],
            out_specs=pl.BlockSpec((tile_m, fout),
                                   lambda i, k, ids, cnt: (i, 0)),
            scratch_shapes=[pltpu.VMEM((tile_m, fout), jnp.float32)],
        ),
        compiler_params=pltpu.CompilerParams(
            dimension_semantics=("parallel", "arbitrary"),
            vmem_limit_bytes=vmem_limit,
        ),
        cost_estimate=cost,
    )(ktile_ids, ktile_cnt, a, xw, b)


def inner_product_decode(z, edge_index, *, sigmoid=True, block_e=8192,
                         compute_dtype=jnp.bfloat16):
    """edge_index: (2, E) int32.  Gather/transpose is XLA glue; the per-edge
    dot + sigmoid runs in a gridded, lane-dense Pallas kernel on bf16 inputs."""
    e = edge_index.shape[1]
    zdim = z.shape[1]

    # Transposed, bf16 layout (Z, E): edges land on the lane axis; bf16 halves
    # the decoder's HBM read traffic (kernel upcasts to f32 before the reduce).
    zs = jnp.take(z, edge_index[0], axis=0).astype(compute_dtype).T
    zd = jnp.take(z, edge_index[1], axis=0).astype(compute_dtype).T

    z_p = _round_up(zdim, 16)               # bf16 packs 16 sublanes per vreg
    block_e = min(block_e, _round_up(e, LANE))
    e_p = _round_up(e, block_e)
    zs = _pad2d(zs, z_p, e_p)
    zd = _pad2d(zd, z_p, e_p)

    out = pl.pallas_call(
        functools.partial(_inner_product_decoder_kernel, sigmoid=sigmoid),
        out_shape=jax.ShapeDtypeStruct((1, e_p), jnp.float32),
        grid_spec=pltpu.PrefetchScalarGridSpec(
            num_scalar_prefetch=0,
            grid=(e_p // block_e,),
            in_specs=[
                pl.BlockSpec((z_p, block_e), lambda i: (0, i)),
                pl.BlockSpec((z_p, block_e), lambda i: (0, i)),
            ],
            out_specs=pl.BlockSpec((1, block_e), lambda i: (0, i)),
        ),
        compiler_params=pltpu.CompilerParams(dimension_semantics=("parallel",)),
    )(zs, zd)
    return out[0, :e]


# ----------------------------------------------------------------------------
# GAE wrapper (mirrors the PyTorch module semantics)
# ----------------------------------------------------------------------------
class GAEPallas:
    def __init__(self, w1, b1, w2, b2, compute_dtype=jnp.bfloat16):
        self.compute_dtype = compute_dtype
        self.fin, self.hid = w1.shape
        self.zdim = w2.shape[1]
        fin_p = _round_up(self.fin, LANE)
        hid_p = _round_up(self.hid, LANE)
        z_p = _round_up(self.zdim, LANE)
        # Pre-pad weights/biases once: feature dims -> 128 lanes, bf16 weights.
        self.w1p = _pad2d(w1, fin_p, hid_p).astype(compute_dtype)
        self.b1p = _pad2d(b1.reshape(1, -1), 1, hid_p).astype(jnp.float32)
        self.w2p = _pad2d(w2, hid_p, z_p).astype(compute_dtype)
        self.b2p = _pad2d(b2.reshape(1, -1), 1, z_p).astype(jnp.float32)

    def encode(self, x, a_hat):
        n = x.shape[0]
        cd = self.compute_dtype
        n_p = _round_up(n, LANE)            # pad only to the lane width (not tile)

        # Tile selection: tile_k large (fewer, bigger A DMAs), tile_m capped at
        # n_p//2 so grid[0] >= 2 and both v7x TensorCores get row tiles.
        tile_m_cap = 512
        if n_p >= 2 * LANE:
            tile_m_cap = min(tile_m_cap, n_p // 2)
        tile_m = _pick_tile(n_p, tile_m_cap)
        tile_k = _pick_tile(n_p, 2048)

        a_pad = _pad2d(a_hat.astype(jnp.float32), n_p, n_p)
        ids, cnt, nnz = _block_nonzero_tables(np.asarray(a_pad), tile_m, tile_k)
        a_p = a_pad.astype(cd)
        x_p = _pad2d(x, n_p, self.w1p.shape[0]).astype(cd)

        # Layer 1 (XW hoisted; layer-1 output stays bf16 for the layer-2 stream).
        xw1 = feature_transform(x_p, self.w1p, out_dtype=cd, tile_m=tile_m)
        h = gcn_aggregate(a_p, xw1, self.b1p, ids, cnt, apply_relu=True,
                          out_dtype=cd, tile_m=tile_m, tile_k=tile_k,
                          nnz_tiles=nnz)
        # Layer 2.
        xw2 = feature_transform(h, self.w2p, out_dtype=cd, tile_m=tile_m)
        z = gcn_aggregate(a_p, xw2, self.b2p, ids, cnt, apply_relu=False,
                          out_dtype=jnp.float32, tile_m=tile_m, tile_k=tile_k,
                          nnz_tiles=nnz)
        return z[:n, :self.zdim]

    # forward() is an alias for encode(), as in the PyTorch module.
    def __call__(self, x, a_hat):
        return self.encode(x, a_hat)

    def decode(self, z, edge_index, sigmoid=True):
        return inner_product_decode(z, edge_index, sigmoid=sigmoid)

    def recon_loss(self, z, pos_edge_index, neg_edge_index):
        # Stable log-sigmoid form: softplus(-s) == -log(sigmoid(s)) and
        # softplus(s) == -log(1 - sigmoid(s)) == torch's expression up to EPS.
        pos_logit = self.decode(z, pos_edge_index, sigmoid=False)
        neg_logit = self.decode(z, neg_edge_index, sigmoid=False)
        pos_loss = jax.nn.softplus(-pos_logit).mean()
        neg_loss = jax.nn.softplus(neg_logit).mean()
        return pos_loss + neg_loss


# ----------------------------------------------------------------------------
# Glue: graph normalization and deterministic parameter init
# ----------------------------------------------------------------------------
def normalized_adjacency(edge_index, num_nodes):
    """A_hat = D^-1/2 (A + I) D^-1/2, dense (glue; not a Pallas kernel)."""
    a = jnp.zeros((num_nodes, num_nodes), jnp.float32)
    a = a.at[edge_index[0], edge_index[1]].set(1.0)
    a = a.at[edge_index[1], edge_index[0]].set(1.0)
    a = a + jnp.eye(num_nodes, dtype=jnp.float32)
    deg = a.sum(axis=1)
    d_inv_sqrt = 1.0 / jnp.sqrt(jnp.maximum(deg, 1e-12))
    return a * d_inv_sqrt[:, None] * d_inv_sqrt[None, :]


def glorot(key, shape):
    fan_in, fan_out = shape
    limit = jnp.sqrt(6.0 / (fan_in + fan_out))
    return jax.random.uniform(key, shape, jnp.float32, -limit, limit)


# ----------------------------------------------------------------------------
# Pure-JAX references (mirror the kernels' bf16-operand / f32-accumulate math)
# ----------------------------------------------------------------------------
def ref_encode(x, a_hat, w1, b1, w2, b2, compute_dtype=jnp.bfloat16):
    cd = compute_dtype
    a = a_hat.astype(cd)
    xw1 = jnp.dot(x.astype(cd), w1.astype(cd),
                  preferred_element_type=jnp.float32).astype(cd)
    h = jnp.maximum(jnp.dot(a, xw1, preferred_element_type=jnp.float32) + b1, 0.0)
    h = h.astype(cd)
    xw2 = jnp.dot(h, w2.astype(cd),
                  preferred_element_type=jnp.float32).astype(cd)
    return jnp.dot(a, xw2, preferred_element_type=jnp.float32) + b2


def ref_decode(z, edge_index, compute_dtype=jnp.bfloat16):
    zs = z[edge_index[0]].astype(compute_dtype).astype(jnp.float32)
    zd = z[edge_index[1]].astype(compute_dtype).astype(jnp.float32)
    return jax.nn.sigmoid(jnp.sum(zs * zd, axis=-1))


if __name__ == "__main__":
    key = jax.random.PRNGKey(0)
    k_feat, k_edge, k_neg, k_w1, k_w2 = jax.random.split(key, 5)

    # Small synthetic graph.
    N, F_IN, HID, Z_DIM, E = 32, 16, 32, 16, 64

    x = jax.random.normal(k_feat, (N, F_IN), jnp.float32)
    pos_edge_index = jax.random.randint(k_edge, (2, E), 0, N, jnp.int32)
    neg_edge_index = jax.random.randint(k_neg, (2, E), 0, N, jnp.int32)
    a_hat = normalized_adjacency(pos_edge_index, N)

    # Deterministic parameter init (glorot weights, zero bias).
    w1 = glorot(k_w1, (F_IN, HID))
    b1 = jnp.zeros((HID,), jnp.float32)
    w2 = glorot(k_w2, (HID, Z_DIM))
    b2 = jnp.zeros((Z_DIM,), jnp.float32)

    model = GAEPallas(w1, b1, w2, b2)

    # forward == encode
    z = jax.block_until_ready(model(x, a_hat))

    # decode + recon loss (both use the Pallas decoder kernel)
    pos_p = jax.block_until_ready(model.decode(z, pos_edge_index))
    loss = jax.block_until_ready(model.recon_loss(z, pos_edge_index, neg_edge_index))

    # Correctness vs pure-JAX references.
    z_ref = ref_encode(x, a_hat, w1, b1, w2, b2)
    np.testing.assert_allclose(np.asarray(z), np.asarray(z_ref), rtol=1e-2, atol=1e-2)

    p_ref = ref_decode(z, pos_edge_index)  # reference mirrors bf16-input math
    np.testing.assert_allclose(np.asarray(pos_p), np.asarray(p_ref),
                               rtol=1e-3, atol=2e-3)
    assert np.isfinite(float(loss))

    print("KERNEL_OK")
</pallas_src>

<mosaic_0001>
module attributes {stable_mosaic.version = 11 : i64} {
  func.func @_feature_transform_kernel(%arg0: i32, %arg1: memref<128x128xbf16, #tpu.memory_space<vmem>>, %arg2: memref<128x128xbf16, #tpu.memory_space<vmem>>, %arg3: memref<128x128xbf16, #tpu.memory_space<vmem>>) attributes {dimension_semantics = [#tpu.dimension_semantics<parallel>], iteration_bounds = array<i64: 1>, scalar_prefetch = 0 : i64, scratch_operands = 0 : i64, tpu.core_type = #tpu.core_type<tc>, window_params = [{transform_indices = @transform_0, window_bounds = array<i64: 128, 128>}, {pipeline_mode = #tpu.pipeline_mode<synchronous>, transform_indices = @transform_1, window_bounds = array<i64: 128, 128>}, {transform_indices = @transform_2, window_bounds = array<i64: 128, 128>}]} {
    %c0 = arith.constant 0 : index
    %c0_0 = arith.constant 0 : index
    %0 = vector.load %arg1[%c0, %c0_0] : memref<128x128xbf16, #tpu.memory_space<vmem>>, vector<128x128xbf16>
    %c0_1 = arith.constant 0 : index
    %c0_2 = arith.constant 0 : index
    %1 = vector.load %arg2[%c0_1, %c0_2] : memref<128x128xbf16, #tpu.memory_space<vmem>>, vector<128x128xbf16>
    %cst = arith.constant dense<0.000000e+00> : vector<128x128xf32>
    %2 = tpu.matmul %0, %1, %cst {dimension_numbers = #tpu.dot_dimension_numbers<[1], [0], [0], [1], [0, 0, 1, 1], [], []>} : vector<128x128xbf16>, vector<128x128xbf16>, vector<128x128xf32> -> vector<128x128xf32>
    %3 = arith.truncf %2 : vector<128x128xf32> to vector<128x128xbf16>
    %c0_3 = arith.constant 0 : index
    %c0_4 = arith.constant 0 : index
    %4 = vector.load %arg3[%c0_3, %c0_4] : memref<128x128xbf16, #tpu.memory_space<vmem>>, vector<128x128xbf16>
    tpu.vector_store %arg3[%c0_3, %c0_4], %3 {strides = array<i32>} : memref<128x128xbf16, #tpu.memory_space<vmem>>, vector<128x128xbf16>,
    return
  }
  func.func @transform_0(%arg0: i32) -> (i32, i32) {
    %c0_i32 = arith.constant 0 : i32
    %c0_i32_0 = arith.constant 0 : i32
    return %arg0, %c0_i32 : i32, i32
  }
  func.func @transform_1(%arg0: i32) -> (i32, i32) {
    %c0_i32 = arith.constant 0 : i32
    %c0_i32_0 = arith.constant 0 : i32
    %c0_i32_1 = arith.constant 0 : i32
    return %c0_i32, %c0_i32_0 : i32, i32
  }
  func.func @transform_2(%arg0: i32) -> (i32, i32) {
    %c0_i32 = arith.constant 0 : i32
    %c0_i32_0 = arith.constant 0 : i32
    return %arg0, %c0_i32 : i32, i32
  }
}

</mosaic_0001>

<bundles_post_ra>
// kernel: tpu_custom_call.1
= control target key start
LH: loop header
LB: loop body
LE: loop exit
PB: predicated region body
PF: predicated region fallthrough
CT: control target
= control target key end

     0   :  { %7 = vsyncpa [#allocation3], 0  ;;  %s681_s0 = inlined_call_operand.hbm [shape: bf16[128,128], index: 0, kind: input, shape index: {}]   ;;  %s682_s1 = inlined_call_operand.hbm [shape: bf16[128,128], index: 1, kind: input, shape index: {}]   ;;  %s683_s2 = inlined_call_operand.hbm [shape: bf16[128,128], index: 2, kind: output, shape index: {}]  }
   0x1   :  { %8 = vsyncpa [#allocation6], 0 }
   0x2   :  { %9 = vsyncpa [#allocation4], 0  ;;  %s616_s9 = smov [#allocation2]   ;;  %s544_s13 = scalar_lea.hbm %s681_s0, 1024 }
   0x3   :  { %s15_s10 = sshll.u32 %s616_s9, 4  ;;  %p545_p0 = scmp.ne.s32.totalorder %s681_s0, %s544_s13  ;;  %s16_s10 = int_to_ptr.vmem [resolvable:$true] %s15_s10 }
   0x4   :  { %p548_p1 = scmp.lt.u32.totalorder %s544_s13, %s681_s0 }
   0x6   :  { %p550_p2 = pnand %p548_p1, %p545_p0 }
   0x8   :  { %553 = shalt.err (!%p550_p2)
}
   0x9   :  { %s554_s18 = scalar_lea.vmem %s16_s10, 1024  ;;  %p559_p4 = scmp.lt.s32.totalorder %s16_s10, %s16_s10 }
   0xa   :  { %p555_p3 = scmp.ne.s32.totalorder %s16_s10, %s554_s18  ;;  %p560_p5 = scmp.lt.s32.totalorder %s554_s18, %s554_s18 }
   0xc   :  { %p561_p6 = por %p560_p5, %p559_p4 }
   0xe   :  { %p562_p7 = pnand %p561_p6, %p555_p3 }
  0x10   :  { %565 = shalt.err (!%p562_p7)
}
  0x11   :  { %s617_s19 = smov 64   ;;  %s618_s20 = smov 4  }
  0x12   :  { %21 = dma.hbm_to_vmem [thread:$0]  %s681_s0, 1024, %s16_s10, [#allocation3], %s617_s19, %s617_s19, %s618_s20  }
  0x13   :  { %s619_s23 = smov [#allocation5]   ;;  %s566_s27 = scalar_lea.hbm %s682_s1, 1024 }
  0x14   :  { %s27_s24 = sshll.u32 %s619_s23, 4  ;;  %p567_p8 = scmp.ne.s32.totalorder %s682_s1, %s566_s27  ;;  %s28_s24 = int_to_ptr.vmem [resolvable:$true] %s27_s24 }
  0x15   :  { %p570_p9 = scmp.lt.u32.totalorder %s566_s27, %s682_s1 }
  0x17   :  { %p572_p10 = pnand %p570_p9, %p567_p8 }
  0x19   :  { %575 = shalt.err (!%p572_p10)
}
  0x1a   :  { %s576_s4 = scalar_lea.vmem %s28_s24, 1024  ;;  %p581_p12 = scmp.lt.s32.totalorder %s28_s24, %s28_s24 }
  0x1b   :  { %p577_p11 = scmp.ne.s32.totalorder %s28_s24, %s576_s4  ;;  %p582_p13 = scmp.lt.s32.totalorder %s576_s4, %s576_s4 }
  0x1d   :  { %p583_p0 = por %p582_p13, %p581_p12 }
  0x1f   :  { %p584_p1 = pnand %p583_p0, %p577_p11 }
  0x21   :  { %587 = shalt.err (!%p584_p1)
}
  0x22   :  { %33 = dma.hbm_to_vmem [thread:$0]  %s682_s1, 1024, %s28_s24, [#allocation6], %s617_s19, %s617_s19, %s618_s20  }
  0x23   :  { %610 = dma.done.wait [#allocation3], 1024  }
  0x24   :  { %611 = vsyncadd [#allocation3], 4294966272 }
  0x25   :  { %612 = dma.done.wait [#allocation6], 1024  }
  0x26   :  { %613 = vsyncadd [#allocation6], 4294966272  ;;  %v528_v0 = vld [vmem:[#allocation5] sm:$0xff]   ;;  %v529_v1 = vld [vmem:[#allocation5 + $0x8] sm:$0xff]   ;;  %s620_s1 = smov [#allocation7]  }
  0x27   :  { %475 = vmatprep.subr.bf16.mxu0 %v528_v0  ;;  %507 = vmatprep.subr.bf16.mxu1 %v528_v0  ;;  %v530_v2 = vld [vmem:[#allocation5 + $0x10] sm:$0xff]   ;;  %v531_v3 = vld [vmem:[#allocation5 + $0x18] sm:$0xff]   ;;  %v536_v4 = vld [vmem:[#allocation2] sm:$0xff]   ;;  %s351_s6 = sshll.u32 %s620_s1, 4  ;;  %s352_s6 = int_to_ptr.vmem [resolvable:$true] %s351_s6 }
  0x28   :  { %476 = vmatpush3.bf16.msra.mxu0 %v528_v0  ;;  %515 = vmatpush3.bf16.msra.mxu1 %v528_v0  ;;  %v537_v5 = vld [vmem:[#allocation2 + $0x20] sm:$0xff]   ;;  %v533_v7 = vld [vmem:[#allocation5 + $0x28] sm:$0xff]   ;;  %v534_v8 = vld [vmem:[#allocation5 + $0x30] sm:$0xff]   ;;  %s588_s7 = scalar_lea.vmem %s352_s6, 1024  ;;  %p593_p3 = scmp.lt.s32.totalorder %s352_s6, %s352_s6 }
  0x29   :  { %477 = vmatprep.subr.bf16.mxu0 %v529_v1  ;;  %508 = vmatprep.subr.bf16.mxu1 %v529_v1  ;;  %v532_v6 = vld [vmem:[#allocation5 + $0x20] sm:$0xff]   ;;  %v535_v9 = vld [vmem:[#allocation5 + $0x38] sm:$0xff]   ;;  %v538_v10 = vld [vmem:[#allocation2 + $0x8] sm:$0xff]   ;;  %p589_p2 = scmp.ne.s32.totalorder %s352_s6, %s588_s7  ;;  %p594_p4 = scmp.lt.s32.totalorder %s588_s7, %s588_s7 }
  0x2a   :  { %491 = vmatprep.mubr.bf16.mxu0 %v536_v4  ;;  %499 = vmatprep.mubr.bf16.mxu1 %v537_v5  ;;  %v539_v11 = vld [vmem:[#allocation2 + $0x28] sm:$0xff]   ;;  %v540_v12 = vld [vmem:[#allocation2 + $0x10] sm:$0xff]   ;;  %v542_v14 = vld [vmem:[#allocation2 + $0x18] sm:$0xff]  }
  0x2b   :  { %v541_v13 = vld [vmem:[#allocation2 + $0x30] sm:$0xff]   ;;  %v543_v15 = vld [vmem:[#allocation2 + $0x38] sm:$0xff]   ;;  %p595_p5 = por %p594_p4, %p593_p3 }
  0x2c   :  { %478 = vmatpush3.bf16.msra.mxu0 %v529_v1  ;;  %516 = vmatpush3.bf16.msra.mxu1 %v529_v1 }
  0x2d   :  { %479 = vmatprep.subr.bf16.mxu0 %v530_v2  ;;  %509 = vmatprep.subr.bf16.mxu1 %v530_v2  ;;  %p596_p6 = pnand %p595_p5, %p589_p2 }
  0x30   :  { %480 = vmatpush3.bf16.msra.mxu0 %v530_v2  ;;  %517 = vmatpush3.bf16.msra.mxu1 %v530_v2 }
  0x31   :  { %481 = vmatprep.subr.bf16.mxu0 %v531_v3  ;;  %510 = vmatprep.subr.bf16.mxu1 %v531_v3 }
  0x34   :  { %482 = vmatpush3.bf16.msra.mxu0 %v531_v3  ;;  %518 = vmatpush3.bf16.msra.mxu1 %v531_v3 }
  0x35   :  { %483 = vmatprep.subr.bf16.mxu0 %v532_v6  ;;  %511 = vmatprep.subr.bf16.mxu1 %v532_v6 }
  0x38   :  { %484 = vmatpush3.bf16.msra.mxu0 %v532_v6  ;;  %519 = vmatpush3.bf16.msra.mxu1 %v532_v6 }
  0x39   :  { %485 = vmatprep.subr.bf16.mxu0 %v533_v7  ;;  %512 = vmatprep.subr.bf16.mxu1 %v533_v7 }
  0x3c   :  { %486 = vmatpush3.bf16.msra.mxu0 %v533_v7  ;;  %520 = vmatpush3.bf16.msra.mxu1 %v533_v7 }
  0x3d   :  { %487 = vmatprep.subr.bf16.mxu0 %v534_v8  ;;  %513 = vmatprep.subr.bf16.mxu1 %v534_v8 }
  0x40   :  { %488 = vmatpush3.bf16.msra.mxu0 %v534_v8  ;;  %521 = vmatpush3.bf16.msra.mxu1 %v534_v8 }
  0x41   :  { %489 = vmatprep.subr.bf16.mxu0 %v535_v9  ;;  %514 = vmatprep.subr.bf16.mxu1 %v535_v9 }
  0x44   :  { %490 = vmatpush3.bf16.msra.mxu0 %v535_v9  ;;  %522 = vmatpush3.bf16.msra.mxu1 %v535_v9 }
  0x47   :  { %492 = vmatmul.mubr.bf16.vlgmr.msra.gmra.mrb[0].mxu0 %v538_v10  ;;  %500 = vmatmul.mubr.bf16.vlgmr.msra.gmra.mrb[0].mxu1 %v539_v11 }
  0x48   :  { %495 = vmatprep.mubr.bf16.mxu0 %v540_v12  ;;  %503 = vmatprep.mubr.bf16.mxu1 %v541_v13 }
  0x4f   :  { %496 = vmatmul.mubr.bf16.gmra.mrb[4].mxu0 %v542_v14  ;;  %504 = vmatmul.mubr.bf16.gmra.mrb[4].mxu1 %v543_v15 }
 0x11a   :  { %v493_v16 = vpop.f32.mrb[0].mxu0  ;;  %v501_v17 = vpop.f32.mrb[0].mxu1 }
 0x11b   :  { %v203_v18 = vpop.f32.mrb[1].mxu0  ;;  %v235_v19 = vpop.f32.mrb[1].mxu1 }
 0x11c   :  { %v494_v20 = vpop.f32.mrb[2].mxu0  ;;  %v502_v21 = vpop.f32.mrb[2].mxu1 }
 0x11d   :  { %v420_v22 = vpack.c.bf16 %v494_v20, %v493_v16  ;;  %v440_v23 = vpack.c.bf16 %v502_v21, %v501_v17  ;;  %v206_v24 = vpop.f32.mrb[3].mxu0  ;;  %v238_v25 = vpop.f32.mrb[3].mxu1 }
 0x11e   :  { %v415_v26 = vpack.c.bf16 %v206_v24, %v203_v18  ;;  %v435_v27 = vpack.c.bf16 %v238_v25, %v235_v19 }
 0x11f   :  { %452 = vst [vmem:[#allocation7 + $0x8] sm:$0xff] %v420_v22   ;;  %456 = vst [vmem:[#allocation7 + $0x28] sm:$0xff] %v440_v23  }
 0x120   :  { %416 = vst [vmem:[#allocation7] sm:$0xff] %v415_v26   ;;  %455 = vst [vmem:[#allocation7 + $0x20] sm:$0xff] %v435_v27  }
 0x122   :  { %v497_v28 = vpop.f32.mrb[4].mxu0  ;;  %v505_v29 = vpop.f32.mrb[4].mxu1 }
 0x123   :  { %v219_v30 = vpop.f32.mrb[5].mxu0  ;;  %v251_v31 = vpop.f32.mrb[5].mxu1 }
 0x124   :  { %v498_v32 = vpop.f32.mrb[6].mxu0  ;;  %v506_v33 = vpop.f32.mrb[6].mxu1 }
 0x125   :  { %v430_v34 = vpack.c.bf16 %v498_v32, %v497_v28  ;;  %v450_v35 = vpack.c.bf16 %v506_v33, %v505_v29  ;;  %v222_v36 = vpop.f32.mrb[7].mxu0  ;;  %v254_v37 = vpop.f32.mrb[7].mxu1 }
 0x126   :  { %v425_v38 = vpack.c.bf16 %v222_v36, %v219_v30  ;;  %v445_v39 = vpack.c.bf16 %v254_v37, %v251_v31 }
 0x127   :  { %454 = vst [vmem:[#allocation7 + $0x18] sm:$0xff] %v430_v34   ;;  %458 = vst [vmem:[#allocation7 + $0x38] sm:$0xff] %v450_v35  }
 0x128   :  { %453 = vst [vmem:[#allocation7 + $0x10] sm:$0xff] %v425_v38   ;;  %457 = vst [vmem:[#allocation7 + $0x30] sm:$0xff] %v445_v39  }
 0x129   :  { %599 = shalt.err (!%p596_p6)
}
 0x12a   :  { %s600_s10 = scalar_lea.hbm %s683_s2, 1024 }
 0x12b   :  { %p601_p7 = scmp.ne.s32.totalorder %s683_s2, %s600_s10  ;;  %p604_p8 = scmp.lt.u32.totalorder %s600_s10, %s683_s2 }
 0x12d   :  { %p606_p9 = pnand %p604_p8, %p601_p7 }
 0x12f   :  { %609 = shalt.err (!%p606_p9)
}
 0x130   :  { %357 = dma.vmem_to_hbm [thread:$0]  %s352_s6, 1024, %s683_s2, [#allocation4], %s617_s19, %s617_s19, %s618_s20  }
 0x131   :  { %614 = dma.done.wait [#allocation4], 1024  }
 0x132   :  { %615 = vsyncadd [#allocation4], 4294966272 }
 0x133   :  { %361 = vsyncpa [#allocation3], 1 }
 0x134   :  { %362 = vsyncpa [#allocation6], 1 }
 0x135   :  { %363 = vsyncpa [#allocation4], 1 }

</bundles_post_ra>
